<compile_context>
chip_gen: v6e
topology: v6e:2x2x1
jax: 0.10.0
libtpu: 0.0.40
codegen_flags: <defaults>
</compile_context>

<pallas_src>
import functools

import jax
import jax.numpy as jnp
from jax.experimental import pallas as pl
from jax.experimental.pallas import tpu as pltpu


def _round_up(x, m):
    return ((x + m - 1) // m) * m


def _gan_kernel(pooled_ref, noise_ref, gw_ref, dw_ref, cw_ref, bias_ref, onehot_ref,
                scalars_ref, logits_ref, *,
                batch, bpad, sup_size, hidden, num_labels, hpad, cpad, epsilon):
    neg_slope = 0.01          # nn.LeakyReLU default negative_slope
    neg_big = -1e30           # finite mask value (avoid 0*inf NaNs on padded class lanes)
    inv_b = 1.0 / batch
    inv_h = 1.0 / hidden
    inv_sup = 1.0 / sup_size

    def leaky_relu(v):
        return jnp.where(v > 0, v, neg_slope * v)

    bias = bias_ref[...]                       # (8, mw) f32: row0=gb, row1=db, row2=cb
    gb = bias[0:1, :hpad]
    db = bias[1:2, :hpad]
    cb = bias[2:3, :cpad]
    onehot = onehot_ref[...]                   # (Bpad, Cpad) f32, zero rows beyond sup_size

    # ---- generator: Linear -> LeakyReLU -> Dropout(identity, eval mode) ----
    g_hidden = leaky_relu(
        jnp.dot(noise_ref[...], gw_ref[...], preferred_element_type=jnp.float32) + gb)
    # TODO(synk): training-mode dropout (g_hidden_dropout_prob) not implemented; eval forward.

    # ---- discriminator hidden: two independent dots (no concat, real path not serialized) ----
    dw = dw_ref[...]
    real_hid = leaky_relu(
        jnp.dot(pooled_ref[...], dw, preferred_element_type=jnp.float32) + db)
    fake_hid = leaky_relu(
        jnp.dot(g_hidden.astype(jnp.bfloat16), dw, preferred_element_type=jnp.float32) + db)

    cw = cw_ref[...]
    real_logits = jnp.dot(real_hid.astype(jnp.bfloat16), cw,
                          preferred_element_type=jnp.float32) + cb
    fake_logits = jnp.dot(fake_hid.astype(jnp.bfloat16), cw,
                          preferred_element_type=jnp.float32) + cb

    lane = jax.lax.broadcasted_iota(jnp.int32, (1, cpad), 1)
    row = jax.lax.broadcasted_iota(jnp.int32, (bpad, 1), 0)
    row_valid = row < batch                     # padded batch rows contribute nothing
    cls_mask = lane < (num_labels + 1)          # valid discriminator classes
    fake_col = lane == num_labels               # the "fake" class column

    def softmax_probs(lg):
        z = jnp.where(cls_mask, lg, neg_big)    # padded lanes -> ~0 probability
        m = jnp.max(z, axis=-1, keepdims=True)
        e = jnp.exp(z - m)
        return e * pl.reciprocal(jnp.sum(e, axis=-1, keepdims=True), approx=True)

    real_probs = softmax_probs(real_logits)
    fake_probs = softmax_probs(fake_logits)
    p_fake_real = jnp.sum(jnp.where(fake_col, real_probs, 0.0), axis=-1, keepdims=True)
    p_fake_fake = jnp.sum(jnp.where(fake_col, fake_probs, 0.0), axis=-1, keepdims=True)

    # ---- generator losses: feature matching + unsupervised ----
    feat_diff = jnp.sum(jnp.where(row_valid, real_hid - fake_hid, 0.0),
                        axis=0, keepdims=True) * inv_b
    lg_feature = jnp.sum(feat_diff * feat_diff) * inv_h      # padded cols are exactly 0
    lg_unsup = -jnp.sum(jnp.where(row_valid,
                                  jnp.log(1.0 - p_fake_fake + epsilon), 0.0)) * inv_b
    lg_loss = lg_feature + lg_unsup

    # ---- discriminator losses ----
    # supervised CE over the first num_labels classes; onehot rows >= sup_size are zero.
    sup_mask = lane < num_labels
    sup_logits = jnp.where(sup_mask, real_logits, neg_big)
    m = jnp.max(sup_logits, axis=-1, keepdims=True)
    lse = m + jnp.log(jnp.sum(jnp.exp(sup_logits - m), axis=-1, keepdims=True))
    ld_sup = -jnp.sum(onehot * (sup_logits - lse)) * inv_sup
    ld_unsup_1 = -jnp.sum(jnp.where(row_valid,
                                    jnp.log(1.0 - p_fake_real + epsilon), 0.0)) * inv_b
    ld_unsup_2 = -jnp.sum(jnp.where(row_valid,
                                    jnp.log(p_fake_fake + epsilon), 0.0)) * inv_b
    ld_loss = ld_sup + ld_unsup_1 + ld_unsup_2

    # ---- lane-dense outputs ----
    logits_ref[...] = real_logits                       # (Bpad, Cpad); slice in XLA
    srow = jax.lax.broadcasted_iota(jnp.int32, scalars_ref.shape, 0)
    scol = jax.lax.broadcasted_iota(jnp.int32, scalars_ref.shape, 1)
    scalars_ref[...] = jnp.where((srow == 0) & (scol == 0), ld_loss,
                                 jnp.where((srow == 0) & (scol == 1), lg_loss, 0.0))


def prepare_gan_params(params, *, hidden_size, noise_size, num_labels):
    """Pad + pack the weights ONCE (hoisted out of the per-forward hot path).

    Weights are stored as (in, out); padded tiles are (8,128)-aligned, bf16 for the MXU.
    Biases stay f32 in one small (8, mw) tile.
    """
    gw, gb, dw, db, cw, cb = params
    hpad = _round_up(hidden_size, 128)
    cpad = _round_up(num_labels + 1, 128)
    npad = _round_up(noise_size, 128)
    mw = max(hpad, cpad)

    gw_pad = jnp.zeros((npad, hpad), jnp.bfloat16).at[
        :noise_size, :hidden_size].set(gw.astype(jnp.bfloat16))
    dw_pad = jnp.zeros((hpad, hpad), jnp.bfloat16).at[
        :hidden_size, :hidden_size].set(dw.astype(jnp.bfloat16))
    cw_pad = jnp.zeros((hpad, cpad), jnp.bfloat16).at[
        :hidden_size, :num_labels + 1].set(cw.astype(jnp.bfloat16))

    bias_tile = jnp.zeros((8, mw), jnp.float32)
    bias_tile = bias_tile.at[0, :hidden_size].set(gb)
    bias_tile = bias_tile.at[1, :hidden_size].set(db)
    bias_tile = bias_tile.at[2, :num_labels + 1].set(cb)

    return dict(gw_pad=gw_pad, dw_pad=dw_pad, cw_pad=cw_pad, bias_tile=bias_tile,
                hidden_size=hidden_size, noise_size=noise_size, num_labels=num_labels,
                hpad=hpad, cpad=cpad, npad=npad)


def gan_for_classification_forward(pooled_output, labels, prepared, *,
                                   noise_key, epsilon=1e-8):
    """Mirrors GanForClassificationBase.forward (labels is not None branch).

    Returns (ld, lg, d_real_logits[:, :-1]).
    """
    B, H = pooled_output.shape
    sup_size = int(labels.shape[0])
    num_labels = prepared["num_labels"]
    noise_size = prepared["noise_size"]
    hpad, cpad, npad = prepared["hpad"], prepared["cpad"], prepared["npad"]
    assert H == prepared["hidden_size"]

    # bf16 sublane multiple (16) keeps every load/store unmasked; also a multiple of 8
    # so the f32 logits store stays tile-aligned.
    bpad = _round_up(B, 16)

    # torch.rand equivalent (uniform [0, 1)), generated outside the kernel (glue).
    noise = jax.random.uniform(noise_key, (B, noise_size), dtype=jnp.float32)

    pooled_pad = jnp.zeros((bpad, hpad), jnp.bfloat16).at[
        :B, :H].set(pooled_output.astype(jnp.bfloat16))
    noise_pad = jnp.zeros((bpad, npad), jnp.bfloat16).at[
        :B, :noise_size].set(noise.astype(jnp.bfloat16))
    onehot = jnp.zeros((bpad, cpad), jnp.float32).at[
        :sup_size, :num_labels].set(jax.nn.one_hot(labels, num_labels, dtype=jnp.float32))

    kernel = functools.partial(
        _gan_kernel, batch=B, bpad=bpad, sup_size=sup_size, hidden=H,
        num_labels=num_labels, hpad=hpad, cpad=cpad, epsilon=float(epsilon))

    operands = (pooled_pad, noise_pad, prepared["gw_pad"], prepared["dw_pad"],
                prepared["cw_pad"], prepared["bias_tile"], onehot)

    # Explicit scoped-VMEM budget from the actual shapes (safe on v5e's 16 MiB default,
    # bounded for v7x's 64 MiB per-TC VMEM).
    operand_bytes = sum(int(a.size) * a.dtype.itemsize for a in operands)
    out_bytes = 8 * 128 * 4 + bpad * cpad * 4
    interm_bytes = (3 * bpad * hpad + 4 * bpad * cpad) * 4
    vmem_limit = 2 * (operand_bytes + out_bytes) + interm_bytes + (4 << 20)
    vmem_limit = int(min(max(vmem_limit, 16 << 20), 64 << 20))

    vmem = pl.BlockSpec(memory_space=pltpu.MemorySpace.VMEM)
    scalars, logits_pad = pl.pallas_call(
        kernel,
        out_shape=(jax.ShapeDtypeStruct((8, 128), jnp.float32),      # [0,0]=ld, [0,1]=lg
                   jax.ShapeDtypeStruct((bpad, cpad), jnp.float32)),  # lane-dense real logits
        in_specs=[vmem] * len(operands),
        out_specs=(vmem, vmem),
        compiler_params=pltpu.CompilerParams(vmem_limit_bytes=vmem_limit),
    )(*operands)

    return scalars[0, 0], scalars[0, 1], logits_pad[:B, :num_labels]


def init_params(key, *, noise_size, hidden_size, num_labels):
    """Deterministic synthetic parameters. Linear weights stored as (in, out)."""
    k = jax.random.split(key, 6)
    gw = jax.random.normal(k[0], (noise_size, hidden_size), jnp.float32) * 0.05
    gb = jax.random.normal(k[1], (hidden_size,), jnp.float32) * 0.05
    dw = jax.random.normal(k[2], (hidden_size, hidden_size), jnp.float32) * 0.05
    db = jax.random.normal(k[3], (hidden_size,), jnp.float32) * 0.05
    cw = jax.random.normal(k[4], (hidden_size, num_labels + 1), jnp.float32) * 0.05
    cb = jax.random.normal(k[5], (num_labels + 1,), jnp.float32) * 0.05
    return gw, gb, dw, db, cw, cb


if __name__ == "__main__":
    # Small config: gan_hidden_size=32, num_labels=4, g_noise_size=100 (GanGenerator default)
    B = 8            # batch (pooled_output rows)
    H = 32           # gan_hidden_size
    L = 4            # num_labels
    NOISE = 100      # noise_size (GanGenerator default)
    SUP = 4          # supervised subset size (labels.shape[0])

    root = jax.random.PRNGKey(0)
    k_pooled, k_labels, k_noise, k_params = jax.random.split(root, 4)

    pooled_output = jax.random.normal(k_pooled, (B, H), jnp.float32)
    labels = jax.random.randint(k_labels, (SUP,), 0, L, dtype=jnp.int32)
    params = init_params(k_params, noise_size=NOISE, hidden_size=H, num_labels=L)

    # Hoisted (once-per-model) weight padding / packing.
    prepared = prepare_gan_params(params, hidden_size=H, noise_size=NOISE, num_labels=L)

    ld, lg, real_logits = gan_for_classification_forward(
        pooled_output, labels, prepared, noise_key=k_noise)

    jax.block_until_ready((ld, lg, real_logits))
    assert real_logits.shape == (B, L)
    assert bool(jnp.isfinite(ld)) and bool(jnp.isfinite(lg))
    print("KERNEL_OK")
</pallas_src>

<mosaic_0001>
module attributes {stable_mosaic.version = 11 : i64} {
  func.func @_gan_kernel(%arg0: memref<16x128xbf16, #tpu.memory_space<vmem>>, %arg1: memref<16x128xbf16, #tpu.memory_space<vmem>>, %arg2: memref<128x128xbf16, #tpu.memory_space<vmem>>, %arg3: memref<128x128xbf16, #tpu.memory_space<vmem>>, %arg4: memref<128x128xbf16, #tpu.memory_space<vmem>>, %arg5: memref<8x128xf32, #tpu.memory_space<vmem>>, %arg6: memref<16x128xf32, #tpu.memory_space<vmem>>, %arg7: memref<8x128xf32, #tpu.memory_space<vmem>>, %arg8: memref<16x128xf32, #tpu.memory_space<vmem>>) attributes {dimension_semantics = [], scalar_prefetch = 0 : i64, scratch_operands = 0 : i64, tpu.core_type = #tpu.core_type<tc>} {
    %c0 = arith.constant 0 : index
    %c0_0 = arith.constant 0 : index
    %0 = vector.load %arg5[%c0, %c0_0] : memref<8x128xf32, #tpu.memory_space<vmem>>, vector<8x128xf32>
    %1 = vector.extract_strided_slice %0 {offsets = [0, 0], sizes = [1, 128], strides = [1, 1]} : vector<8x128xf32> to vector<1x128xf32>
    %2 = vector.extract_strided_slice %0 {offsets = [1, 0], sizes = [1, 128], strides = [1, 1]} : vector<8x128xf32> to vector<1x128xf32>
    %3 = vector.extract_strided_slice %0 {offsets = [2, 0], sizes = [1, 128], strides = [1, 1]} : vector<8x128xf32> to vector<1x128xf32>
    %c0_1 = arith.constant 0 : index
    %c0_2 = arith.constant 0 : index
    %4 = vector.load %arg6[%c0_1, %c0_2] : memref<16x128xf32, #tpu.memory_space<vmem>>, vector<16x128xf32>
    %c0_3 = arith.constant 0 : index
    %c0_4 = arith.constant 0 : index
    %5 = vector.load %arg1[%c0_3, %c0_4] : memref<16x128xbf16, #tpu.memory_space<vmem>>, vector<16x128xbf16>
    %c0_5 = arith.constant 0 : index
    %c0_6 = arith.constant 0 : index
    %6 = vector.load %arg2[%c0_5, %c0_6] : memref<128x128xbf16, #tpu.memory_space<vmem>>, vector<128x128xbf16>
    %cst = arith.constant dense<0.000000e+00> : vector<16x128xf32>
    %7 = tpu.matmul %5, %6, %cst {dimension_numbers = #tpu.dot_dimension_numbers<[1], [0], [0], [1], [0, 0, 1, 1], [], []>} : vector<16x128xbf16>, vector<128x128xbf16>, vector<16x128xf32> -> vector<16x128xf32>
    %8 = vector.broadcast %1 : vector<1x128xf32> to vector<16x128xf32>
    %9 = arith.addf %7, %8 : vector<16x128xf32>
    %cst_7 = arith.constant 0.000000e+00 : f32
    %10 = vector.broadcast %cst_7 : f32 to vector<16x128xf32>
    %11 = arith.cmpf ogt, %9, %10 : vector<16x128xf32>
    %cst_8 = arith.constant 0.00999999977 : f32
    %12 = vector.broadcast %cst_8 : f32 to vector<16x128xf32>
    %13 = arith.mulf %12, %9 : vector<16x128xf32>
    %14 = arith.select %11, %9, %13 : vector<16x128xi1>, vector<16x128xf32>
    %c0_9 = arith.constant 0 : index
    %c0_10 = arith.constant 0 : index
    %15 = vector.load %arg3[%c0_9, %c0_10] : memref<128x128xbf16, #tpu.memory_space<vmem>>, vector<128x128xbf16>
    %c0_11 = arith.constant 0 : index
    %c0_12 = arith.constant 0 : index
    %16 = vector.load %arg0[%c0_11, %c0_12] : memref<16x128xbf16, #tpu.memory_space<vmem>>, vector<16x128xbf16>
    %cst_13 = arith.constant dense<0.000000e+00> : vector<16x128xf32>
    %17 = tpu.matmul %16, %15, %cst_13 {dimension_numbers = #tpu.dot_dimension_numbers<[1], [0], [0], [1], [0, 0, 1, 1], [], []>} : vector<16x128xbf16>, vector<128x128xbf16>, vector<16x128xf32> -> vector<16x128xf32>
    %18 = vector.broadcast %2 : vector<1x128xf32> to vector<16x128xf32>
    %19 = arith.addf %17, %18 : vector<16x128xf32>
    %cst_14 = arith.constant 0.000000e+00 : f32
    %20 = vector.broadcast %cst_14 : f32 to vector<16x128xf32>
    %21 = arith.cmpf ogt, %19, %20 : vector<16x128xf32>
    %cst_15 = arith.constant 0.00999999977 : f32
    %22 = vector.broadcast %cst_15 : f32 to vector<16x128xf32>
    %23 = arith.mulf %22, %19 : vector<16x128xf32>
    %24 = arith.select %21, %19, %23 : vector<16x128xi1>, vector<16x128xf32>
    %25 = arith.truncf %14 : vector<16x128xf32> to vector<16x128xbf16>
    %cst_16 = arith.constant dense<0.000000e+00> : vector<16x128xf32>
    %26 = tpu.matmul %25, %15, %cst_16 {dimension_numbers = #tpu.dot_dimension_numbers<[1], [0], [0], [1], [0, 0, 1, 1], [], []>} : vector<16x128xbf16>, vector<128x128xbf16>, vector<16x128xf32> -> vector<16x128xf32>
    %27 = vector.broadcast %2 : vector<1x128xf32> to vector<16x128xf32>
    %28 = arith.addf %26, %27 : vector<16x128xf32>
    %cst_17 = arith.constant 0.000000e+00 : f32
    %29 = vector.broadcast %cst_17 : f32 to vector<16x128xf32>
    %30 = arith.cmpf ogt, %28, %29 : vector<16x128xf32>
    %cst_18 = arith.constant 0.00999999977 : f32
    %31 = vector.broadcast %cst_18 : f32 to vector<16x128xf32>
    %32 = arith.mulf %31, %28 : vector<16x128xf32>
    %33 = arith.select %30, %28, %32 : vector<16x128xi1>, vector<16x128xf32>
    %c0_19 = arith.constant 0 : index
    %c0_20 = arith.constant 0 : index
    %34 = vector.load %arg4[%c0_19, %c0_20] : memref<128x128xbf16, #tpu.memory_space<vmem>>, vector<128x128xbf16>
    %35 = arith.truncf %24 : vector<16x128xf32> to vector<16x128xbf16>
    %cst_21 = arith.constant dense<0.000000e+00> : vector<16x128xf32>
    %36 = tpu.matmul %35, %34, %cst_21 {dimension_numbers = #tpu.dot_dimension_numbers<[1], [0], [0], [1], [0, 0, 1, 1], [], []>} : vector<16x128xbf16>, vector<128x128xbf16>, vector<16x128xf32> -> vector<16x128xf32>
    %37 = vector.broadcast %3 : vector<1x128xf32> to vector<16x128xf32>
    %38 = arith.addf %36, %37 : vector<16x128xf32>
    %39 = arith.truncf %33 : vector<16x128xf32> to vector<16x128xbf16>
    %cst_22 = arith.constant dense<0.000000e+00> : vector<16x128xf32>
    %40 = tpu.matmul %39, %34, %cst_22 {dimension_numbers = #tpu.dot_dimension_numbers<[1], [0], [0], [1], [0, 0, 1, 1], [], []>} : vector<16x128xbf16>, vector<128x128xbf16>, vector<16x128xf32> -> vector<16x128xf32>
    %41 = vector.broadcast %3 : vector<1x128xf32> to vector<16x128xf32>
    %42 = arith.addf %40, %41 : vector<16x128xf32>
    %43 = tpu.iota {dimensions = array<i32: 1>} : vector<1x128xi32>
    %44 = tpu.iota {dimensions = array<i32: 0>} : vector<16x1xi32>
    %c8_i32 = arith.constant 8 : i32
    %45 = vector.broadcast %c8_i32 : i32 to vector<16x1xi32>
    %46 = arith.cmpi slt, %44, %45 : vector<16x1xi32>
    %c5_i32 = arith.constant 5 : i32
    %47 = vector.broadcast %c5_i32 : i32 to vector<1x128xi32>
    %48 = arith.cmpi slt, %43, %47 : vector<1x128xi32>
    %c4_i32 = arith.constant 4 : i32
    %49 = vector.broadcast %c4_i32 : i32 to vector<1x128xi32>
    %50 = arith.cmpi eq, %43, %49 : vector<1x128xi32>
    %cst_23 = arith.constant -1.000000e+30 : f32
    %51 = vector.shape_cast %48 : vector<1x128xi1> to vector<1x128xi1>
    %52 = vector.broadcast %51 : vector<1x128xi1> to vector<16x128xi1>
    %53 = vector.broadcast %cst_23 : f32 to vector<16x128xf32>
    %54 = arith.select %52, %38, %53 : vector<16x128xi1>, vector<16x128xf32>
    %cst_24 = arith.constant dense<0xFF800000> : vector<16xf32>
    %55 = vector.multi_reduction <maximumf>, %54, %cst_24 [1] : vector<16x128xf32> to vector<16xf32>
    %56 = vector.shape_cast %55 : vector<16xf32> to vector<16x1xf32>
    %57 = vector.broadcast %56 : vector<16x1xf32> to vector<16x128xf32>
    %58 = arith.subf %54, %57 : vector<16x128xf32>
    %59 = math.exp %58 : vector<16x128xf32>
    %cst_25 = arith.constant dense<0.000000e+00> : vector<16xf32>
    %60 = vector.multi_reduction <add>, %59, %cst_25 [1] : vector<16x128xf32> to vector<16xf32>
    %61 = vector.shape_cast %60 : vector<16xf32> to vector<16x1xf32>
    %62 = tpu.reciprocal %61 {approx = true} : vector<16x1xf32> -> vector<16x1xf32>
    %63 = vector.broadcast %62 : vector<16x1xf32> to vector<16x128xf32>
    %64 = arith.mulf %59, %63 : vector<16x128xf32>
    %cst_26 = arith.constant -1.000000e+30 : f32
    %65 = vector.shape_cast %48 : vector<1x128xi1> to vector<1x128xi1>
    %66 = vector.broadcast %65 : vector<1x128xi1> to vector<16x128xi1>
    %67 = vector.broadcast %cst_26 : f32 to vector<16x128xf32>
    %68 = arith.select %66, %42, %67 : vector<16x128xi1>, vector<16x128xf32>
    %cst_27 = arith.constant dense<0xFF800000> : vector<16xf32>
    %69 = vector.multi_reduction <maximumf>, %68, %cst_27 [1] : vector<16x128xf32> to vector<16xf32>
    %70 = vector.shape_cast %69 : vector<16xf32> to vector<16x1xf32>
    %71 = vector.broadcast %70 : vector<16x1xf32> to vector<16x128xf32>
    %72 = arith.subf %68, %71 : vector<16x128xf32>
    %73 = math.exp %72 : vector<16x128xf32>
    %cst_28 = arith.constant dense<0.000000e+00> : vector<16xf32>
    %74 = vector.multi_reduction <add>, %73, %cst_28 [1] : vector<16x128xf32> to vector<16xf32>
    %75 = vector.shape_cast %74 : vector<16xf32> to vector<16x1xf32>
    %76 = tpu.reciprocal %75 {approx = true} : vector<16x1xf32> -> vector<16x1xf32>
    %77 = vector.broadcast %76 : vector<16x1xf32> to vector<16x128xf32>
    %78 = arith.mulf %73, %77 : vector<16x128xf32>
    %cst_29 = arith.constant 0.000000e+00 : f32
    %79 = vector.shape_cast %50 : vector<1x128xi1> to vector<1x128xi1>
    %80 = vector.broadcast %79 : vector<1x128xi1> to vector<16x128xi1>
    %81 = vector.broadcast %cst_29 : f32 to vector<16x128xf32>
    %82 = arith.select %80, %64, %81 : vector<16x128xi1>, vector<16x128xf32>
    %cst_30 = arith.constant dense<0.000000e+00> : vector<16xf32>
    %83 = vector.multi_reduction <add>, %82, %cst_30 [1] : vector<16x128xf32> to vector<16xf32>
    %84 = vector.shape_cast %83 : vector<16xf32> to vector<16x1xf32>
    %cst_31 = arith.constant 0.000000e+00 : f32
    %85 = vector.shape_cast %50 : vector<1x128xi1> to vector<1x128xi1>
    %86 = vector.broadcast %85 : vector<1x128xi1> to vector<16x128xi1>
    %87 = vector.broadcast %cst_31 : f32 to vector<16x128xf32>
    %88 = arith.select %86, %78, %87 : vector<16x128xi1>, vector<16x128xf32>
    %cst_32 = arith.constant dense<0.000000e+00> : vector<16xf32>
    %89 = vector.multi_reduction <add>, %88, %cst_32 [1] : vector<16x128xf32> to vector<16xf32>
    %90 = vector.shape_cast %89 : vector<16xf32> to vector<16x1xf32>
    %91 = arith.subf %24, %33 : vector<16x128xf32>
    %cst_33 = arith.constant 0.000000e+00 : f32
    %92 = vector.shape_cast %46 : vector<16x1xi1> to vector<16x1xi1>
    %93 = vector.broadcast %92 : vector<16x1xi1> to vector<16x128xi1>
    %94 = vector.broadcast %cst_33 : f32 to vector<16x128xf32>
    %95 = arith.select %93, %91, %94 : vector<16x128xi1>, vector<16x128xf32>
    %cst_34 = arith.constant dense<0.000000e+00> : vector<128xf32>
    %96 = vector.multi_reduction <add>, %95, %cst_34 [0] : vector<16x128xf32> to vector<128xf32>
    %97 = vector.shape_cast %96 : vector<128xf32> to vector<1x128xf32>
    %cst_35 = arith.constant 1.250000e-01 : f32
    %98 = vector.broadcast %cst_35 : f32 to vector<1x128xf32>
    %99 = arith.mulf %97, %98 : vector<1x128xf32>
    %100 = arith.mulf %99, %99 : vector<1x128xf32>
    %101 = vector.shape_cast %100 : vector<1x128xf32> to vector<1x1x128xf32>
    %cst_36 = arith.constant dense<0.000000e+00> : vector<1xf32>
    %102 = vector.multi_reduction <add>, %101, %cst_36 [1, 2] : vector<1x1x128xf32> to vector<1xf32>
    %103 = vector.shape_cast %102 : vector<1xf32> to vector<1x1x1xf32>
    %104 = vector.extract %103[0, 0, 0] : f32 from vector<1x1x1xf32>
    %cst_37 = arith.constant 3.125000e-02 : f32
    %105 = arith.mulf %104, %cst_37 : f32
    %cst_38 = arith.constant 1.000000e+00 : f32
    %106 = vector.broadcast %cst_38 : f32 to vector<16x1xf32>
    %107 = arith.subf %106, %90 : vector<16x1xf32>
    %cst_39 = arith.constant 9.99999993E-9 : f32
    %108 = vector.broadcast %cst_39 : f32 to vector<16x1xf32>
    %109 = arith.addf %107, %108 : vector<16x1xf32>
    %110 = math.log %109 : vector<16x1xf32>
    %cst_40 = arith.constant 0.000000e+00 : f32
    %111 = vector.broadcast %cst_40 : f32 to vector<16x1xf32>
    %112 = arith.select %46, %110, %111 : vector<16x1xi1>, vector<16x1xf32>
    %113 = vector.shape_cast %112 : vector<16x1xf32> to vector<1x16x1xf32>
    %cst_41 = arith.constant dense<0.000000e+00> : vector<1xf32>
    %114 = vector.multi_reduction <add>, %113, %cst_41 [1, 2] : vector<1x16x1xf32> to vector<1xf32>
    %115 = vector.shape_cast %114 : vector<1xf32> to vector<1x1x1xf32>
    %116 = vector.extract %115[0, 0, 0] : f32 from vector<1x1x1xf32>
    %cst_42 = arith.constant 0.000000e+00 : f32
    %117 = arith.subf %cst_42, %116 : f32
    %cst_43 = arith.constant 1.250000e-01 : f32
    %118 = arith.mulf %117, %cst_43 : f32
    %119 = arith.addf %105, %118 : f32
    %c4_i32_44 = arith.constant 4 : i32
    %120 = vector.broadcast %c4_i32_44 : i32 to vector<1x128xi32>
    %121 = arith.cmpi slt, %43, %120 : vector<1x128xi32>
    %cst_45 = arith.constant -1.000000e+30 : f32
    %122 = vector.shape_cast %121 : vector<1x128xi1> to vector<1x128xi1>
    %123 = vector.broadcast %122 : vector<1x128xi1> to vector<16x128xi1>
    %124 = vector.broadcast %cst_45 : f32 to vector<16x128xf32>
    %125 = arith.select %123, %38, %124 : vector<16x128xi1>, vector<16x128xf32>
    %cst_46 = arith.constant dense<0xFF800000> : vector<16xf32>
    %126 = vector.multi_reduction <maximumf>, %125, %cst_46 [1] : vector<16x128xf32> to vector<16xf32>
    %127 = vector.shape_cast %126 : vector<16xf32> to vector<16x1xf32>
    %128 = vector.broadcast %127 : vector<16x1xf32> to vector<16x128xf32>
    %129 = arith.subf %125, %128 : vector<16x128xf32>
    %130 = math.exp %129 : vector<16x128xf32>
    %cst_47 = arith.constant dense<0.000000e+00> : vector<16xf32>
    %131 = vector.multi_reduction <add>, %130, %cst_47 [1] : vector<16x128xf32> to vector<16xf32>
    %132 = vector.shape_cast %131 : vector<16xf32> to vector<16x1xf32>
    %133 = math.log %132 : vector<16x1xf32>
    %134 = arith.addf %127, %133 : vector<16x1xf32>
    %135 = vector.broadcast %134 : vector<16x1xf32> to vector<16x128xf32>
    %136 = arith.subf %125, %135 : vector<16x128xf32>
    %137 = arith.mulf %4, %136 : vector<16x128xf32>
    %138 = vector.shape_cast %137 : vector<16x128xf32> to vector<1x16x128xf32>
    %cst_48 = arith.constant dense<0.000000e+00> : vector<1xf32>
    %139 = vector.multi_reduction <add>, %138, %cst_48 [1, 2] : vector<1x16x128xf32> to vector<1xf32>
    %140 = vector.shape_cast %139 : vector<1xf32> to vector<1x1x1xf32>
    %141 = vector.extract %140[0, 0, 0] : f32 from vector<1x1x1xf32>
    %cst_49 = arith.constant 0.000000e+00 : f32
    %142 = arith.subf %cst_49, %141 : f32
    %cst_50 = arith.constant 2.500000e-01 : f32
    %143 = arith.mulf %142, %cst_50 : f32
    %cst_51 = arith.constant 1.000000e+00 : f32
    %144 = vector.broadcast %cst_51 : f32 to vector<16x1xf32>
    %145 = arith.subf %144, %84 : vector<16x1xf32>
    %cst_52 = arith.constant 9.99999993E-9 : f32
    %146 = vector.broadcast %cst_52 : f32 to vector<16x1xf32>
    %147 = arith.addf %145, %146 : vector<16x1xf32>
    %148 = math.log %147 : vector<16x1xf32>
    %cst_53 = arith.constant 0.000000e+00 : f32
    %149 = vector.broadcast %cst_53 : f32 to vector<16x1xf32>
    %150 = arith.select %46, %148, %149 : vector<16x1xi1>, vector<16x1xf32>
    %151 = vector.shape_cast %150 : vector<16x1xf32> to vector<1x16x1xf32>
    %cst_54 = arith.constant dense<0.000000e+00> : vector<1xf32>
    %152 = vector.multi_reduction <add>, %151, %cst_54 [1, 2] : vector<1x16x1xf32> to vector<1xf32>
    %153 = vector.shape_cast %152 : vector<1xf32> to vector<1x1x1xf32>
    %154 = vector.extract %153[0, 0, 0] : f32 from vector<1x1x1xf32>
    %cst_55 = arith.constant 0.000000e+00 : f32
    %155 = arith.subf %cst_55, %154 : f32
    %cst_56 = arith.constant 1.250000e-01 : f32
    %156 = arith.mulf %155, %cst_56 : f32
    %cst_57 = arith.constant 9.99999993E-9 : f32
    %157 = vector.broadcast %cst_57 : f32 to vector<16x1xf32>
    %158 = arith.addf %90, %157 : vector<16x1xf32>
    %159 = math.log %158 : vector<16x1xf32>
    %cst_58 = arith.constant 0.000000e+00 : f32
    %160 = vector.broadcast %cst_58 : f32 to vector<16x1xf32>
    %161 = arith.select %46, %159, %160 : vector<16x1xi1>, vector<16x1xf32>
    %162 = vector.shape_cast %161 : vector<16x1xf32> to vector<1x16x1xf32>
    %cst_59 = arith.constant dense<0.000000e+00> : vector<1xf32>
    %163 = vector.multi_reduction <add>, %162, %cst_59 [1, 2] : vector<1x16x1xf32> to vector<1xf32>
    %164 = vector.shape_cast %163 : vector<1xf32> to vector<1x1x1xf32>
    %165 = vector.extract %164[0, 0, 0] : f32 from vector<1x1x1xf32>
    %cst_60 = arith.constant 0.000000e+00 : f32
    %166 = arith.subf %cst_60, %165 : f32
    %cst_61 = arith.constant 1.250000e-01 : f32
    %167 = arith.mulf %166, %cst_61 : f32
    %168 = arith.addf %143, %156 : f32
    %169 = arith.addf %168, %167 : f32
    %c0_62 = arith.constant 0 : index
    %c0_63 = arith.constant 0 : index
    %170 = vector.load %arg8[%c0_62, %c0_63] : memref<16x128xf32, #tpu.memory_space<vmem>>, vector<16x128xf32>
    tpu.vector_store %arg8[%c0_62, %c0_63], %38 {strides = array<i32>} : memref<16x128xf32, #tpu.memory_space<vmem>>, vector<16x128xf32>,
    %171 = tpu.iota {dimensions = array<i32: 0>} : vector<8x128xi32>
    %172 = tpu.iota {dimensions = array<i32: 1>} : vector<8x128xi32>
    %c0_i32 = arith.constant 0 : i32
    %173 = vector.broadcast %c0_i32 : i32 to vector<8x128xi32>
    %174 = arith.cmpi eq, %171, %173 : vector<8x128xi32>
    %c0_i32_64 = arith.constant 0 : i32
    %175 = vector.broadcast %c0_i32_64 : i32 to vector<8x128xi32>
    %176 = arith.cmpi eq, %172, %175 : vector<8x128xi32>
    %177 = arith.andi %174, %176 : vector<8x128xi1>
    %c0_i32_65 = arith.constant 0 : i32
    %178 = vector.broadcast %c0_i32_65 : i32 to vector<8x128xi32>
    %179 = arith.cmpi eq, %171, %178 : vector<8x128xi32>
    %c1_i32 = arith.constant 1 : i32
    %180 = vector.broadcast %c1_i32 : i32 to vector<8x128xi32>
    %181 = arith.cmpi eq, %172, %180 : vector<8x128xi32>
    %182 = arith.andi %179, %181 : vector<8x128xi1>
    %cst_66 = arith.constant 0.000000e+00 : f32
    %183 = vector.broadcast %119 : f32 to vector<8x128xf32>
    %184 = vector.broadcast %cst_66 : f32 to vector<8x128xf32>
    %185 = arith.select %182, %183, %184 : vector<8x128xi1>, vector<8x128xf32>
    %186 = vector.broadcast %169 : f32 to vector<8x128xf32>
    %187 = arith.select %177, %186, %185 : vector<8x128xi1>, vector<8x128xf32>
    %c0_67 = arith.constant 0 : index
    %c0_68 = arith.constant 0 : index
    %188 = vector.load %arg7[%c0_67, %c0_68] : memref<8x128xf32, #tpu.memory_space<vmem>>, vector<8x128xf32>
    tpu.vector_store %arg7[%c0_67, %c0_68], %187 {strides = array<i32>} : memref<8x128xf32, #tpu.memory_space<vmem>>, vector<8x128xf32>,
    return
  }
}

</mosaic_0001>

<bundles_post_ra>
// kernel: tpu_custom_call.1
= control target key start
LH: loop header
LB: loop body
LE: loop exit
PB: predicated region body
PF: predicated region fallthrough
CT: control target
= control target key end

     0   :  { %14 = vsyncpa [#allocation3], 0  ;;  %s1428_s0 = inlined_call_operand.hbm [shape: bf16[16,128], index: 0, kind: input, shape index: {}]   ;;  %s1429_s1 = inlined_call_operand.hbm [shape: bf16[16,128], index: 1, kind: input, shape index: {}]   ;;  %s1430_s2 = inlined_call_operand.hbm [shape: bf16[128,128], index: 2, kind: input, shape index: {}]   ;;  %s1431_s3 = inlined_call_operand.hbm [shape: bf16[128,128], index: 3, kind: input, shape index: {}]   ;;  %s1432_s4 = inlined_call_operand.hbm [shape: bf16[128,128], index: 4, kind: input, shape index: {}]   ;;  %s1433_s5 = inlined_call_operand.vmem [shape: f32[8,128], index: 5, kind: input, shape index: {}]   ;;  %s1434_s6 = inlined_call_operand.hbm [shape: f32[16,128], index: 6, kind: input, shape index: {}]   ;;  %s1435_s7 = inlined_call_operand.hbm [shape: f32[8,128], index: 7, kind: output, shape index: {0}]   ;;  %s1436_s8 = inlined_call_operand.hbm [shape: f32[16,128], index: 8, kind: output, shape index: {1}]  }
   0x1   :  { %15 = vsyncpa [#allocation6], 0 }
   0x2   :  { %16 = vsyncpa [#allocation9], 0 }
   0x3   :  { %17 = vsyncpa [#allocation12], 0 }
   0x4   :  { %18 = vsyncpa [#allocation4], 0 }
   0x5   :  { %19 = vsyncpa [#allocation15], 0  ;;  %s1232_s27 = smov [#allocation5]   ;;  %s1233_s29 = smov [#allocation8]  }
   0x6   :  { %s37_s28 = sshll.u32 %s1232_s27, 4  ;;  %s61_s30 = sshll.u32 %s1233_s29, 4  ;;  %s38_s28 = int_to_ptr.vmem [resolvable:$true] %s37_s28  ;;  %s62_s30 = int_to_ptr.vmem [resolvable:$true] %s61_s30 }
   0x7   :  { %s1068_s9 = scalar_lea.vmem %s38_s28, 128  ;;  %p1073_p1 = scmp.lt.s32.totalorder %s38_s28, %s38_s28 }
   0x8   :  { %p1069_p0 = scmp.ne.s32.totalorder %s38_s28, %s1068_s9  ;;  %p1074_p2 = scmp.lt.s32.totalorder %s1068_s9, %s1068_s9 }
   0xa   :  { %p1075_p3 = por %p1074_p2, %p1073_p1 }
   0xc   :  { %p1076_p4 = pnand %p1075_p3, %p1069_p0 }
   0xe   :  { %1079 = shalt.err (!%p1076_p4)
}
   0xf   :  { %s1234_s10 = smov 64   ;;  %s1235_s11 = smov 4  }
  0x10   :  { %43 = dma.hbm_to_vmem [thread:$0]  %s1429_s1, 128, %s38_s28, [#allocation6], %s1234_s10, %s1234_s10, %s1235_s11  }
  0x11   :  { %s1088_s14 = scalar_lea.vmem %s62_s30, 1024  ;;  %p1093_p6 = scmp.lt.s32.totalorder %s62_s30, %s62_s30 }
  0x12   :  { %p1089_p5 = scmp.ne.s32.totalorder %s62_s30, %s1088_s14  ;;  %p1094_p7 = scmp.lt.s32.totalorder %s1088_s14, %s1088_s14 }
  0x14   :  { %p1095_p8 = por %p1094_p7, %p1093_p6 }
  0x16   :  { %p1096_p9 = pnand %p1095_p8, %p1089_p5 }
  0x18   :  { %1099 = shalt.err (!%p1096_p9)
}
  0x19   :  { %67 = dma.hbm_to_vmem [thread:$0]  %s1431_s3, 1024, %s62_s30, [#allocation9], %s1234_s10, %s1234_s10, %s1235_s11  }
  0x1a   :  { %s1236_s17 = smov [#allocation2]   ;;  %s1237_s19 = smov [#allocation7]  }
  0x1b   :  { %s25_s18 = sshll.u32 %s1236_s17, 4  ;;  %s49_s20 = sshll.u32 %s1237_s19, 4  ;;  %s26_s18 = int_to_ptr.vmem [resolvable:$true] %s25_s18  ;;  %s50_s20 = int_to_ptr.vmem [resolvable:$true] %s49_s20 }
  0x1c   :  { %s1108_s1 = scalar_lea.vmem %s26_s18, 128  ;;  %p1113_p11 = scmp.lt.s32.totalorder %s26_s18, %s26_s18 }
  0x1d   :  { %p1109_p10 = scmp.ne.s32.totalorder %s26_s18, %s1108_s1  ;;  %p1114_p12 = scmp.lt.s32.totalorder %s1108_s1, %s1108_s1 }
  0x1f   :  { %p1115_p13 = por %p1114_p12, %p1113_p11 }
  0x21   :  { %p1116_p0 = pnand %p1115_p13, %p1109_p10 }
  0x23   :  { %1119 = shalt.err (!%p1116_p0)
}
  0x24   :  { %31 = dma.hbm_to_vmem [thread:$0]  %s1428_s0, 128, %s26_s18, [#allocation3], %s1234_s10, %s1234_s10, %s1235_s11  }
  0x25   :  { %s1128_s3 = scalar_lea.vmem %s50_s20, 1024  ;;  %p1133_p2 = scmp.lt.s32.totalorder %s50_s20, %s50_s20 }
  0x26   :  { %p1129_p1 = scmp.ne.s32.totalorder %s50_s20, %s1128_s3  ;;  %p1134_p3 = scmp.lt.s32.totalorder %s1128_s3, %s1128_s3 }
  0x28   :  { %p1135_p4 = por %p1134_p3, %p1133_p2 }
  0x2a   :  { %p1136_p5 = pnand %p1135_p4, %p1129_p1 }
  0x2c   :  { %1139 = shalt.err (!%p1136_p5)
}
  0x2d   :  { %55 = dma.hbm_to_vmem [thread:$0]  %s1430_s2, 1024, %s50_s20, [#allocation6], %s1234_s10, %s1234_s10, %s1235_s11  }
  0x2e   :  { %s1238_s25 = smov [#allocation10]   ;;  %s1239_s27 = smov [#allocation11]  }
  0x2f   :  { %s73_s26 = sshll.u32 %s1238_s25, 4  ;;  %s87_s28 = sshll.u32 %s1239_s27, 4  ;;  %s74_s26 = int_to_ptr.vmem [resolvable:$true] %s73_s26  ;;  %s88_s28 = int_to_ptr.vmem [resolvable:$true] %s87_s28 }
  0x30   :  { %s1148_s0 = scalar_lea.vmem %s74_s26, 1024  ;;  %p1153_p7 = scmp.lt.s32.totalorder %s74_s26, %s74_s26 }
  0x31   :  { %p1149_p6 = scmp.ne.s32.totalorder %s74_s26, %s1148_s0  ;;  %p1154_p8 = scmp.lt.s32.totalorder %s1148_s0, %s1148_s0 }
  0x33   :  { %p1155_p9 = por %p1154_p8, %p1153_p7 }
  0x35   :  { %p1156_p10 = pnand %p1155_p9, %p1149_p6 }
  0x37   :  { %1159 = shalt.err (!%p1156_p10)
}
  0x38   :  { %79 = dma.hbm_to_vmem [thread:$0]  %s1432_s4, 1024, %s74_s26, [#allocation9], %s1234_s10, %s1234_s10, %s1235_s11  }
  0x39   :  { %s1168_s2 = scalar_lea.vmem %s88_s28, 256  ;;  %p1173_p12 = scmp.lt.s32.totalorder %s88_s28, %s88_s28 }
  0x3a   :  { %p1169_p11 = scmp.ne.s32.totalorder %s88_s28, %s1168_s2  ;;  %p1174_p13 = scmp.lt.s32.totalorder %s1168_s2, %s1168_s2 }
  0x3c   :  { %p1175_p0 = por %p1174_p13, %p1173_p12 }
  0x3e   :  { %p1176_p1 = pnand %p1175_p0, %p1169_p11 }
  0x40   :  { %1179 = shalt.err (!%p1176_p1)
}
  0x41   :  { %s1240_s9 = smov 128   ;;  %s1241_s12 = smov 8  }
  0x42   :  { %93 = dma.hbm_to_vmem [thread:$0]  %s1434_s6, 256, %s88_s28, [#allocation12], %s1240_s9, %s1240_s9, %s1241_s12  }
  0x43   :  { %1220 = dma.done.wait [#allocation3], 128  }
  0x44   :  { %1221 = vsyncadd [#allocation3], 4294967168 }
  0x45   :  { %1222 = dma.done.wait [#allocation6], 1152  }
  0x46   :  { %1223 = vsyncadd [#allocation6], 4294966144 }
  0x47   :  { %1224 = dma.done.wait [#allocation9], 2048  }
  0x48   :  { %1225 = vsyncadd [#allocation9], 4294965248 }
  0x49   :  { %1226 = dma.done.wait [#allocation12], 256  }
  0x4a   :  { %1227 = vsyncadd [#allocation12], 4294967040  ;;  %v1242_v0 = vmov 0.0   ;;  %vm1243_vm0 = vmmov 0   ;;  %v1012_v1 = vld [vmem:[#allocation7 + $0x38] sm:$0xff]   ;;  %v1013_v2 = vld [vmem:[#allocation7 + $0x30] sm:$0xff]   ;;  %v134_v27 = vlaneseq }
  0x4b   :  { %888 = vmatprep.subr.bf16.mxu0 %v1242_v0  ;;  %904 = vmatprep.mubr.msk.bf16.mxu0 %vm1243_vm0, %v1242_v0  ;;  %v1014_v3 = vld [vmem:[#allocation7 + $0x28] sm:$0xff]   ;;  %v1021_v4 = vld [vmem:[#allocation8 + $0x38] sm:$0xff]   ;;  %v1015_v5 = vld [vmem:[#allocation7 + $0x20] sm:$0xff]   ;;  %vm644_vm10 = vcmask 1040384   ;;  %vm666_vm11 = vcmask 7168  }
  0x4c   :  { %908 = vmatprep.subr.bf16.mxu1 %v1242_v0  ;;  %924 = vmatprep.mubr.msk.bf16.mxu1 %vm1243_vm0, %v1242_v0  ;;  %v1022_v6 = vld [vmem:[#allocation8 + $0x30] sm:$0xff]   ;;  %v1016_v7 = vld [vmem:[#allocation7 + $0x18] sm:$0xff]   ;;  %v1023_v8 = vld [vmem:[#allocation8 + $0x28] sm:$0xff]   ;;  %v1368_v28 = vshrl.u32 %v134_v27, 7  ;;  %v1388_v63 = vand.u32 127, %v134_v27 }
  0x4d   :  { %889 = vmatpush3.bf16.msra.mxu0 %v1012_v1  ;;  %909 = vmatpush3.bf16.msra.mxu1 %v1021_v4  ;;  %v1017_v9 = vld [vmem:[#allocation7 + $0x10] sm:$0xff]   ;;  %v1024_v10 = vld [vmem:[#allocation8 + $0x20] sm:$0xff]   ;;  %v1018_v11 = vld [vmem:[#allocation7 + $0x8] sm:$0xff]  }
  0x4e   :  { %890 = vmatprep.subr.bf16.mxu0 %v1242_v0  ;;  %910 = vmatprep.subr.bf16.mxu1 %v1242_v0  ;;  %v1025_v12 = vld [vmem:[#allocation8 + $0x18] sm:$0xff]   ;;  %v1019_v13 = vld [vmem:[#allocation7] sm:$0xff]   ;;  %v1026_v14 = vld [vmem:[#allocation8 + $0x10] sm:$0xff]   ;;  %v136_v29 = vsub.s32 0, %v1368_v28  ;;  %v259_v34 = vsub.s32 1, %v1368_v28  ;;  %v429_v59 = vsub.s32 2, %v1368_v28 }
  0x4f   :  { %v1020_v15 = vld [vmem:[#allocation5] sm:$0xff]   ;;  %v1027_v16 = vld [vmem:[#allocation8 + $0x8] sm:$0xff]   ;;  %v1028_v17 = vld [vmem:[#allocation8] sm:$0xff]   ;;  %vm682_vm7 = vcmp.lt.s32.totalorder %v1388_v63, 4  ;;  %vm569_vm8 = vcmp.lt.s32.totalorder %v1388_v63, 5  ;;  %vm570_vm9 = vcmp.eq.s32.totalorder %v1388_v63, 4 }
  0x50   :  { %v1029_v18 = vld [vmem:[#allocation2] sm:$0xff]   ;;  %v1030_v19 = vld [vmem:[#allocation10 + $0x38] sm:$0xff]   ;;  %v1032_v21 = vld [vmem:[#allocation10 + $0x28] sm:$0xff]  }
  0x51   :  { %891 = vmatpush3.bf16.msra.mxu0 %v1013_v2  ;;  %911 = vmatpush3.bf16.msra.mxu1 %v1022_v6  ;;  %v1031_v20 = vld [vmem:[#allocation10 + $0x30] sm:$0xff]   ;;  %v1033_v22 = vld [vmem:[#allocation10 + $0x20] sm:$0xff]   ;;  %v1034_v23 = vld [vmem:[#allocation10 + $0x18] sm:$0xff]  }
  0x52   :  { %892 = vmatprep.subr.bf16.mxu0 %v1242_v0  ;;  %912 = vmatprep.subr.bf16.mxu1 %v1242_v0  ;;  %v1035_v24 = vld [vmem:[#allocation10 + $0x10] sm:$0xff]   ;;  %v1036_v25 = vld [vmem:[#allocation10 + $0x8] sm:$0xff]   ;;  %v1037_v26 = vld [vmem:[#allocation10] sm:$0xff]  }
  0x53   :  { %v113_v30 = vld [vmem:[%s1433_s5] sm:$0xff]  ;;  %s1244_s5 = smov [#allocation14]  }
  0x54   :  { %v137_v31 = vrot.slane %v113_v30, %v136_v29  ;;  %v260_v39 = vrot.slane %v113_v30, %v259_v34  ;;  %v430_v2 = vrot.slane %v113_v30, %v429_v59  ;;  %s798_s10 = sshll.u32 %s1244_s5, 4  ;;  %s799_s10 = int_to_ptr.vmem [resolvable:$true] %s798_s10 }
  0x55   :  { %893 = vmatpush3.bf16.msra.mxu0 %v1014_v3  ;;  %913 = vmatpush3.bf16.msra.mxu1 %v1023_v8  ;;  %s1180_s11 = scalar_lea.vmem %s799_s10, 256  ;;  %p1185_p3 = scmp.lt.s32.totalorder %s799_s10, %s799_s10 }
  0x56   :  { %894 = vmatprep.subr.bf16.mxu0 %v1242_v0  ;;  %914 = vmatprep.subr.bf16.mxu1 %v1242_v0  ;;  %p1181_p2 = scmp.ne.s32.totalorder %s799_s10, %s1180_s11  ;;  %p1186_p4 = scmp.lt.s32.totalorder %s1180_s11, %s1180_s11 }
  0x58   :  { %p1187_p5 = por %p1186_p4, %p1185_p3 }
  0x59   :  { %895 = vmatpush3.bf16.msra.mxu0 %v1015_v5  ;;  %915 = vmatpush3.bf16.msra.mxu1 %v1024_v10 }
  0x5a   :  { %896 = vmatprep.subr.bf16.mxu0 %v1242_v0  ;;  %916 = vmatprep.subr.bf16.mxu1 %v1242_v0  ;;  %p1188_p6 = pnand %p1187_p5, %p1181_p2 }
  0x5d   :  { %897 = vmatpush3.bf16.msra.mxu0 %v1016_v7  ;;  %917 = vmatpush3.bf16.msra.mxu1 %v1025_v12 }
  0x5e   :  { %898 = vmatprep.subr.bf16.mxu0 %v1242_v0  ;;  %918 = vmatprep.subr.bf16.mxu1 %v1242_v0 }
  0x61   :  { %899 = vmatpush3.bf16.msra.mxu0 %v1017_v9  ;;  %919 = vmatpush3.bf16.msra.mxu1 %v1026_v14 }
  0x62   :  { %900 = vmatprep.subr.bf16.mxu0 %v1242_v0  ;;  %920 = vmatprep.subr.bf16.mxu1 %v1242_v0 }
  0x65   :  { %901 = vmatpush3.bf16.msra.mxu0 %v1018_v11  ;;  %921 = vmatpush3.bf16.msra.mxu1 %v1027_v16 }
  0x66   :  { %902 = vmatprep.subr.bf16.mxu0 %v1242_v0  ;;  %922 = vmatprep.subr.bf16.mxu1 %v1242_v0 }
  0x69   :  { %903 = vmatpush3.bf16.msra.mxu0 %v1019_v13  ;;  %923 = vmatpush3.bf16.msra.mxu1 %v1028_v17 }
  0x6a   :  { %928 = vmatprep.subr.bf16.mxu0 %v1242_v0  ;;  %948 = vmatprep.subr.bf16.mxu1 %v1242_v0 }
  0x6c   :  { %905 = vmatmul.mubr.bf16.vlgmr.msra.gmra.mxu0 %v1020_v15  ;;  %925 = vmatmul.mubr.bf16.vlgmr.msra.gmra.mxu1 %v1029_v18 }
  0x6d   :  { %929 = vmatpush3.bf16.msra.mxu0 %v1021_v4  ;;  %944 = vmatprep.mubr.msk.bf16.mxu0 %vm1243_vm0, %v1242_v0 }
  0x6e   :  { %930 = vmatprep.subr.bf16.mxu0 %v1242_v0  ;;  %964 = vmatprep.mubr.msk.bf16.mxu1 %vm1243_vm0, %v1242_v0 }
  0x6f   :  { %949 = vmatpush3.bf16.msra.mxu1 %v1030_v19 }
  0x70   :  { %950 = vmatprep.subr.bf16.mxu1 %v1242_v0 }
  0x71   :  { %931 = vmatpush3.bf16.msra.mxu0 %v1022_v6 }
  0x72   :  { %932 = vmatprep.subr.bf16.mxu0 %v1242_v0 }
  0x73   :  { %951 = vmatpush3.bf16.msra.mxu1 %v1031_v20 }
  0x74   :  { %952 = vmatprep.subr.bf16.mxu1 %v1242_v0 }
  0x75   :  { %933 = vmatpush3.bf16.msra.mxu0 %v1023_v8 }
  0x76   :  { %934 = vmatprep.subr.bf16.mxu0 %v1242_v0 }
  0x77   :  { %953 = vmatpush3.bf16.msra.mxu1 %v1032_v21 }
  0x78   :  { %954 = vmatprep.subr.bf16.mxu1 %v1242_v0 }
  0x79   :  { %935 = vmatpush3.bf16.msra.mxu0 %v1024_v10 }
  0x7a   :  { %936 = vmatprep.subr.bf16.mxu0 %v1242_v0 }
  0x7b   :  { %955 = vmatpush3.bf16.msra.mxu1 %v1033_v22 }
  0x7c   :  { %956 = vmatprep.subr.bf16.mxu1 %v1242_v0 }
  0x7d   :  { %937 = vmatpush3.bf16.msra.mxu0 %v1025_v12 }
  0x7e   :  { %938 = vmatprep.subr.bf16.mxu0 %v1242_v0 }
  0x7f   :  { %957 = vmatpush3.bf16.msra.mxu1 %v1034_v23 }
  0x80   :  { %958 = vmatprep.subr.bf16.mxu1 %v1242_v0 }
  0x81   :  { %939 = vmatpush3.bf16.msra.mxu0 %v1026_v14 }
  0x82   :  { %940 = vmatprep.subr.bf16.mxu0 %v1242_v0 }
  0x83   :  { %959 = vmatpush3.bf16.msra.mxu1 %v1035_v24 }
  0x84   :  { %960 = vmatprep.subr.bf16.mxu1 %v1242_v0 }
  0x85   :  { %941 = vmatpush3.bf16.msra.mxu0 %v1027_v16 }
  0x86   :  { %942 = vmatprep.subr.bf16.mxu0 %v1242_v0 }
  0x87   :  { %961 = vmatpush3.bf16.msra.mxu1 %v1036_v25 }
  0x88   :  { %962 = vmatprep.subr.bf16.mxu1 %v1242_v0 }
  0x89   :  { %943 = vmatpush3.bf16.msra.mxu0 %v1028_v17 }
  0x8a   :  { %968 = vmatprep.subr.bf16.mxu0 %v1242_v0 }
  0x8b   :  { %963 = vmatpush3.bf16.msra.mxu1 %v1037_v26 }
 0x12c   :  { %v226_v32 = vpop.f32.mrf.mxu0  ;;  %v349_v44 = vpop.f32.mrf.mxu1 }
 0x12d   :  { %v227_v33 = vadd.f32 %v226_v32, %v137_v31  ;;  %v350_v46 = vadd.f32 %v349_v44, %v260_v39 }
 0x12e   :  { %v906_v35 = vpop.f32.mrf.mxu0  ;;  %v926_v47 = vpop.f32.mrf.mxu1 }
 0x12f   :  { %v235_v37 = vmul.f32 0.01, %v227_v33  ;;  %vm233_vm1 = vcmp.gt.f32.partialorder %v227_v33, 0.0  ;;  %v358_v48 = vmul.f32 0.01, %v350_v46  ;;  %vm356_vm3 = vcmp.gt.f32.partialorder %v350_v46, 0.0 }
 0x130   :  { %v229_v36 = vpop.f32.mrf.mxu0  ;;  %v352_v49 = vpop.f32.mrf.mxu1 }
 0x131   :  { %v230_v38 = vadd.f32 %v229_v36, %v137_v31  ;;  %v237_v42 = vsel %vm233_vm1, %v227_v33, %v235_v37  ;;  %v353_v50 = vadd.f32 %v352_v49, %v260_v39  ;;  %v1378_v52 = vsel %vm356_vm3, %v350_v46, %v358_v48 }
 0x132   :  { %v907_v40 = vpop.f32.mrf.mxu0  ;;  %v927_v51 = vpop.f32.mrf.mxu1 }
 0x133   :  { %vm234_vm2 = vcmp.gt.f32.partialorder %v230_v38, 0.0  ;;  %v236_v41 = vmul.f32 0.01, %v230_v38  ;;  %vm357_vm4 = vcmp.gt.f32.partialorder %v353_v50, 0.0  ;;  %v359_v53 = vmul.f32 0.01, %v353_v50 }
 0x135   :  { %v238_v43 = vsel %vm234_vm2, %v230_v38, %v236_v41  ;;  %v361_v54 = vsel %vm357_vm4, %v353_v50, %v359_v53 }
 0x136   :  { %v362_v45 = vpack.c.bf16 %v238_v43, %v237_v42  ;;  %v426_v55 = vpack.c.bf16 %v361_v54, %v1378_v52 }
 0x138   :  { %945 = vmatmul.mubr.bf16.vlgmr.msra.gmra.mxu0 %v362_v45  ;;  %965 = vmatmul.mubr.bf16.vlgmr.msra.gmra.mxu1 %v426_v55 }
 0x139   :  { %969 = vmatpush3.bf16.msra.mxu0 %v1030_v19  ;;  %984 = vmatprep.mubr.msk.bf16.mxu0 %vm1243_vm0, %v1242_v0 }
 0x13a   :  { %970 = vmatprep.subr.bf16.mxu0 %v1242_v0 }
 0x13d   :  { %971 = vmatpush3.bf16.msra.mxu0 %v1031_v20 }
 0x13e   :  { %972 = vmatprep.subr.bf16.mxu0 %v1242_v0 }
 0x141   :  { %973 = vmatpush3.bf16.msra.mxu0 %v1032_v21 }
 0x142   :  { %974 = vmatprep.subr.bf16.mxu0 %v1242_v0 }
 0x145   :  { %975 = vmatpush3.bf16.msra.mxu0 %v1033_v22 }
 0x146   :  { %976 = vmatprep.subr.bf16.mxu0 %v1242_v0 }
 0x149   :  { %977 = vmatpush3.bf16.msra.mxu0 %v1034_v23 }
 0x14a   :  { %978 = vmatprep.subr.bf16.mxu0 %v1242_v0 }
 0x14d   :  { %979 = vmatpush3.bf16.msra.mxu0 %v1035_v24 }
 0x14e   :  { %980 = vmatprep.subr.bf16.mxu0 %v1242_v0 }
 0x151   :  { %981 = vmatpush3.bf16.msra.mxu0 %v1036_v25 }
 0x152   :  { %982 = vmatprep.subr.bf16.mxu0 %v1242_v0 }
 0x155   :  { %983 = vmatpush3.bf16.msra.mxu0 %v1037_v26 }
 0x1f8   :  { %v397_v56 = vpop.f32.mrf.mxu0  ;;  %v513_v6 = vpop.f32.mrf.mxu1 }
 0x1f9   :  { %v398_v57 = vadd.f32 %v397_v56, %v260_v39  ;;  %v514_v7 = vadd.f32 %v513_v6, %v430_v2 }
 0x1fa   :  { %v946_v58 = vpop.f32.mrf.mxu0  ;;  %v966_v8 = vpop.f32.mrf.mxu1 }
 0x1fb   :  { %v406_v61 = vmul.f32 0.01, %v398_v57  ;;  %vm404_vm5 = vcmp.gt.f32.partialorder %v398_v57, 0.0  ;;  %771 = vst [vmem:[#allocation14] sm:$0xff] %v514_v7  ;;  %v1392_v9 = vsel %vm682_vm7, %v514_v7, -1e+30 }
 0x1fc   :  { %v400_v60 = vpop.f32.mrf.mxu0  ;;  %v573_v10 = vsel %vm569_vm8, %v514_v7, -1e+30  ;;  %687 = vmax.xlane.f32.xlu1 %v1392_v9  ;;  %v516_v11 = vpop.f32.mrf.mxu1 }
 0x1fd   :  { %v401_v62 = vadd.f32 %v400_v60, %v260_v39  ;;  %v408_v4 = vsel %vm404_vm5, %v398_v57, %v406_v61  ;;  %575 = vmax.xlane.f32.xlu0 %v573_v10  ;;  %v517_v12 = vadd.f32 %v516_v11, %v430_v2  ;;  %v114_v11 = vld [vmem:[#allocation11] sm:$0xff] }
 0x1fe   :  { %v947_v1 = vpop.f32.mrf.mxu0  ;;  %v967_v13 = vpop.f32.mrf.mxu1  ;;  %v627_v30 = vsub.f32 %v1378_v52, %v408_v4 }
 0x1ff   :  { %vm405_vm6 = vcmp.gt.f32.partialorder %v401_v62, 0.0  ;;  %v407_v3 = vmul.f32 0.01, %v401_v62  ;;  %772 = vst [vmem:[#allocation14 + $0x8] sm:$0xff] %v517_v12  ;;  %v1397_v14 = vsel %vm682_vm7, %v517_v12, -1e+30 }
 0x200   :  { %689 = vmax.xlane.f32.xlu1 %v1397_v14  ;;  %v636_v31 = vrot.slane %v627_v30, 4  ;;  %v115_v12 = vld [vmem:[#allocation11 + $0x8] sm:$0xff] }
 0x201   :  { %v409_v5 = vsel %vm405_vm6, %v401_v62, %v407_v3 }
 0x202   :  { %v520_v0 = vpack.c.bf16 %v409_v5, %v408_v4  ;;  %v637_v33 = vadd.f32 %v636_v31, %v627_v30 }
 0x204   :  { %985 = vmatmul.mubr.bf16.vlgmr.msra.gmra.mxu0 %v520_v0  ;;  %v638_v37 = vrot.slane %v637_v33, 2 }
 0x206   :  { %v639_v41 = vadd.f32 %v638_v37, %v637_v33 }
 0x208   :  { %v640_v42 = vrot.slane %v639_v41, 1 }
 0x20a   :  { %v641_v43 = vadd.f32 %v640_v42, %v639_v41 }
 0x20c   :  { %v642_v45 = vmul.f32 0.125, %v641_v43 }
 0x20e   :  { %v643_v50 = vmul.f32 %v642_v45, %v642_v45 }
 0x210   :  { %v645_v51 = vsel %vm644_vm10, %v643_v50, 0.0 }
 0x285   :  { %v1400_v17 = vpop.xlane.xlu1 %687 }
 0x286   :  { %v576_v15 = vpop.xlane.xlu0 %575  ;;  %v691_v18 = vsub.f32 %v1392_v9, %v1400_v17 }
 0x287   :  { %v579_v16 = vsub.f32 %v573_v10, %v576_v15 }
 0x288   :  { %v693_v20 = vmul.f32 1.442695, %v691_v18 }
 0x289   :  { %v581_v19 = vmul.f32 1.442695, %v579_v16  ;;  %v690_v32 = vpop.xlane.xlu1 %689 }
 0x28a   :  { %v692_v35 = vsub.f32 %v1397_v14, %v690_v32 }
 0x28b   :  { %1038 = vpow2.f32 %v581_v19 }
 0x28c   :  { %1040 = vpow2.f32 %v693_v20  ;;  %v695_v40 = vmul.f32 1.442695, %v692_v35 }
 0x298   :  { %v1039_v26 = vpop.eup %1038 }
 0x299   :  { %v1041_v29 = vpop.eup %1040 }
 0x2c4   :  { %v555_v21 = vpop.f32.mrf.mxu0 }
 0x2c5   :  { %v556_v22 = vadd.f32 %v555_v21, %v430_v2 }
 0x2c6   :  { %v986_v23 = vpop.f32.mrf.mxu0 }
 0x2c7   :  { %v593_v24 = vsel %vm569_vm8, %v556_v22, -1e+30 }
 0x2c8   :  { %595 = vmax.xlane.f32.xlu0 %v593_v24  ;;  %v558_v25 = vpop.f32.mrf.mxu0 }
 0x2ca   :  { %v987_v27 = vpop.f32.mrf.mxu0 }
 0x2cc   :  { %585 = vadd.xlane.f32.xlu0 %v1039_v26 }
 0x2d0   :  { %697 = vadd.xlane.f32.xlu0 %v1041_v29 }
 0x351   :  { %v596_v34 = vpop.xlane.xlu0 %595 }
 0x352   :  { %v599_v36 = vsub.f32 %v593_v24, %v596_v34 }
 0x354   :  { %v601_v38 = vmul.f32 1.442695, %v599_v36 }
 0x355   :  { %v586_v39 = vpop.xlane.xlu0 %585 }
 0x356   :  { %1042 = vpow2.f32 %v601_v38 }
 0x357   :  { %1044 = vrcp.f32 %v586_v39 }
 0x358   :  { %1046 = vpow2.f32 %v695_v40 }
 0x359   :  { %v698_v52 = vpop.xlane.xlu0 %697 }
 0x35a   :  { %1048 = vlog2.f32 %v698_v52 }
 0x363   :  { %v1043_v44 = vpop.eup %1042 }
 0x364   :  { %v1045_v46 = vpop.eup %1044  ;;  %605 = vadd.xlane.f32.xlu1 %v1043_v44 }
 0x365   :  { %v591_v47 = vmul.f32 %v1045_v46, %v1039_v26  ;;  %v1047_v48 = vpop.eup %1046 }
 0x367   :  { %v615_v49 = vsel %vm570_vm9, %v591_v47, 0.0  ;;  %v1049_v58 = vpop.eup %1048 }
 0x368   :  { %617 = vadd.xlane.f32.xlu0 %v615_v49  ;;  %699 = vadd.xlane.f32.xlu1 %v1047_v48  ;;  %v702_v60 = vmul.f32 0.6931472, %v1049_v58 }
 0x36a   :  { %v705_v3 = vadd.f32 %v702_v60, %v1400_v17 }
 0x36c   :  { %646 = vadd.xlane.f32.xlu0 %v645_v51  ;;  %v707_v10 = vsub.f32 %v1392_v9, %v705_v3 }
 0x36e   :  { %v709_v15 = vmul.f32 %v707_v10, %v114_v11 }
 0x3ed   :  { %v606_v53 = vpop.xlane.xlu1 %605 }
 0x3ee   :  { %1050 = vrcp.f32 %v606_v53 }
 0x3f1   :  { %v618_v54 = vpop.xlane.xlu0 %617  ;;  %v700_v55 = vpop.xlane.xlu1 %699 }
 0x3f2   :  { %1052 = vlog2.f32 %v700_v55  ;;  %v723_v17 = vsub.f32 1.0, %v618_v54 }
 0x3f4   :  { %v725_v19 = vadd.f32 1e-08, %v723_v17 }
 0x3f5   :  { %v647_v56 = vpop.xlane.xlu0 %646 }
 0x3f6   :  { %v648_v57 = vrot.slane %v647_v56, 4 }
 0x3f8   :  { %v649_v59 = vadd.f32 %v648_v57, %v647_v56 }
 0x3fa   :  { %v650_v61 = vrot.slane %v649_v59, 2 }
 0x3fb   :  { %v1051_v62 = vpop.eup %1050 }
 0x3fc   :  { %v611_v1 = vmul.f32 %v1051_v62, %v1043_v44  ;;  %v651_v2 = vadd.f32 %v650_v61, %v649_v59 }
 0x3fe   :  { %v621_v4 = vsel %vm570_vm9, %v611_v1, 0.0  ;;  %v652_v5 = vrot.slane %v651_v2, 1 }
 0x3ff   :  { %v1053_v6 = vpop.eup %1052  ;;  %623 = vadd.xlane.f32.xlu1 %v621_v4 }
 0x400   :  { %v704_v0 = vmul.f32 0.6931472, %v1053_v6  ;;  %v653_v7 = vadd.f32 %v652_v5, %v651_v2 }
 0x402   :  { %v706_v8 = vadd.f32 %v704_v0, %v690_v32  ;;  %988 = vpush %v653_v7 }
 0x404   :  { %v708_v13 = vsub.f32 %v1397_v14, %v706_v8 }
 0x406   :  { %v710_v16 = vmul.f32 %v708_v13, %v115_v12 }
 0x408   :  { %v711_v18 = vadd.f32 %v710_v16, %v709_v15 }
 0x40a   :  { %712 = vadd.xlane.f32.xlu0 %v711_v18 }
 0x488   :  { %v624_v20 = vpop.xlane.xlu1 %623 }
 0x489   :  { %v656_v21 = vsub.f32 1.0, %v624_v20  ;;  %v747_v22 = vadd.f32 1e-08, %v624_v20 }
 0x48b   :  { %v658_v23 = vadd.f32 1e-08, %v656_v21  ;;  %1054 = vlog2.f32 %v747_v22 }
 0x48c   :  { %1056 = vlog2.f32 %v725_v19 }
 0x48d   :  { %1058 = vlog2.f32 %v658_v23 }
 0x498   :  { %v1055_v24 = vpop.eup %1054 }
 0x499   :  { %v1057_v25 = vpop.eup %1056  ;;  %v750_v9 = vmul.f32 0.6931472, %v1055_v24 }
 0x49a   :  { %v1059_v26 = vpop.eup %1058  ;;  %v728_v30 = vmul.f32 0.6931472, %v1057_v25 }
 0x49b   :  { %v755_v27 = vsel %vm666_vm11, %v750_v9, 0.0  ;;  %v661_v14 = vmul.f32 0.6931472, %v1059_v26 }
 0x49c   :  { %758 = vadd.xlane.f32.xlu0 %v755_v27  ;;  %v733_v31 = vsel %vm666_vm11, %v728_v30, 0.0 }
 0x49d   :  { %v667_v29 = vsel %vm666_vm11, %v661_v14, 0.0 }
 0x49e   :  { %670 = vadd.xlane.f32.xlu1 %v667_v29 }
 0x4a2   :  { %736 = vadd.xlane.f32.xlu1 %v733_v31 }
 0x4a3   :  { %1191 = shalt.err (!%p1188_p6)
}
 0x4a4   :  { %804 = dma.vmem_to_hbm [thread:$0]  %s799_s10, 256, %s1436_s8, [#allocation15], %s1240_s9, %s1240_s9, %s1241_s12   ;;  %v713_v32 = vpop.xlane.xlu0 %712  ;;  %vm773_vm12 = vcmp.eq.s32.totalorder %v1368_v28, 0  ;;  %vm776_vm13 = vcmp.eq.s32.totalorder %v1388_v63, 1  ;;  %vm774_vm14 = vcmp.eq.s32.totalorder %v1388_v63, 0 }
 0x4a5   :  { %v714_v33 = vrot.slane %v713_v32, 4  ;;  %s989_s8 = spop %988  ;;  %vm777_vm15 = vmand %vm773_vm12, %vm776_vm13  ;;  %s1245_s29 = smov [#allocation13]  }
 0x4a6   :  { %s655_s20 = smul.f32 0.03125, %s989_s8  ;;  %s789_s30 = sshll.u32 %s1245_s29, 4  ;;  %vm775_vm0 = vmand %vm773_vm12, %vm774_vm14  ;;  %s790_s30 = int_to_ptr.vmem [resolvable:$true] %s789_s30 }
 0x4a7   :  { %v715_v34 = vadd.f32 %v714_v33, %v713_v32  ;;  %s1200_s9 = scalar_lea.vmem %s790_s30, 128  ;;  %p1205_p8 = scmp.lt.s32.totalorder %s790_s30, %s790_s30 }
 0x4a8   :  { %p1201_p7 = scmp.ne.s32.totalorder %s790_s30, %s1200_s9  ;;  %p1206_p9 = scmp.lt.s32.totalorder %s1200_s9, %s1200_s9 }
 0x4a9   :  { %v716_v37 = vrot.slane %v715_v34, 2 }
 0x4aa   :  { %p1207_p10 = por %p1206_p9, %p1205_p8 }
 0x4ab   :  { %v717_v44 = vadd.f32 %v716_v37, %v715_v34 }
 0x4ac   :  { %p1208_p11 = pnand %p1207_p10, %p1201_p7 }
 0x4ad   :  { %v718_v50 = vrot.slane %v717_v44, 1 }
 0x4af   :  { %v719_v55 = vadd.f32 %v718_v50, %v717_v44 }
 0x525   :  { %v759_v35 = vpop.xlane.xlu0 %758 }
 0x526   :  { %v760_v36 = vrot.slane %v759_v35, 4 }
 0x527   :  { %v671_v38 = vpop.xlane.xlu1 %670 }
 0x528   :  { %v761_v39 = vadd.f32 %v760_v36, %v759_v35  ;;  %v672_v40 = vrot.slane %v671_v38, 4 }
 0x52a   :  { %v673_v41 = vadd.f32 %v672_v40, %v671_v38  ;;  %v762_v42 = vrot.slane %v761_v39, 2 }
 0x52b   :  { %v737_v43 = vpop.xlane.xlu1 %736 }
 0x52c   :  { %v674_v45 = vrot.slane %v673_v41, 2  ;;  %v738_v46 = vrot.slane %v737_v43, 4  ;;  %v763_v49 = vadd.f32 %v762_v42, %v761_v39 }
 0x52e   :  { %v739_v47 = vadd.f32 %v738_v46, %v737_v43  ;;  %v675_v48 = vadd.f32 %v674_v45, %v673_v41  ;;  %v764_v56 = vrot.slane %v763_v49, 1 }
 0x530   :  { %v740_v51 = vrot.slane %v739_v47, 2  ;;  %v676_v52 = vrot.slane %v675_v48, 1  ;;  %v765_v59 = vadd.f32 %v764_v56, %v763_v49 }
 0x532   :  { %v741_v53 = vadd.f32 %v740_v51, %v739_v47  ;;  %v677_v54 = vadd.f32 %v676_v52, %v675_v48 }
 0x534   :  { %990 = vpush %v677_v54  ;;  %v742_v57 = vrot.slane %v741_v53, 1 }
 0x535   :  { %992 = vpush %v719_v55 }
 0x536   :  { %v743_v58 = vadd.f32 %v742_v57, %v741_v53 }
 0x538   :  { %994 = vpush %v743_v58 }
 0x539   :  { %996 = vpush %v765_v59 }
 0x565   :  { %s991_s17 = spop %990 }
 0x566   :  { %s679_s18 = ssub.f32 0.0, %s991_s17  ;;  %s993_s19 = spop %992 }
 0x567   :  { %s721_s21 = ssub.f32 0.0, %s993_s19 }
 0x568   :  { %s680_s1 = smul.f32 0.125, %s679_s18 }
 0x569   :  { %s995_s22 = spop %994  ;;  %s722_s25 = smul.f32 0.25, %s721_s21 }
 0x56a   :  { %s681_s3 = sadd.f32 %s680_s1, %s655_s20  ;;  %s997_s23 = spop %996 }
 0x56b   :  { %s745_s24 = ssub.f32 0.0, %s995_s22 }
 0x56c   :  { %s767_s26 = ssub.f32 0.0, %s997_s23  ;;  %v778_v60 = vstv %s681_s3 }
 0x56d   :  { %s746_s27 = smul.f32 0.125, %s745_s24  ;;  %v779_v61 = vsel %vm777_vm15, %v778_v60, 0.0 }
 0x56e   :  { %s768_s0 = smul.f32 0.125, %s767_s26 }
 0x56f   :  { %s769_s28 = sadd.f32 %s746_s27, %s722_s25 }
 0x571   :  { %s770_s2 = sadd.f32 %s769_s28, %s768_s0 }
 0x573   :  { %v780_v62 = vstv %s770_s2 }
 0x574   :  { %v781_v1 = vsel %vm775_vm0, %v780_v62, %v779_v61 }
 0x575   :  { %782 = vst [vmem:[#allocation13] sm:$0xff] %v781_v1 }
 0x576   :  { %1211 = shalt.err (!%p1208_p11)
}
 0x577   :  { %792 = dma.vmem_to_hbm [thread:$0]  %s790_s30, 128, %s1435_s7, [#allocation4]  }
 0x578   :  { %1228 = dma.done.wait [#allocation4], 128  }
 0x579   :  { %1229 = vsyncadd [#allocation4], 4294967168 }
 0x57a   :  { %1230 = dma.done.wait [#allocation15], 256  }
 0x57b   :  { %1231 = vsyncadd [#allocation15], 4294967040 }
 0x57c   :  { %811 = vsyncpa [#allocation3], 1 }
 0x57d   :  { %812 = vsyncpa [#allocation6], 1 }
 0x57e   :  { %813 = vsyncpa [#allocation9], 1 }
 0x57f   :  { %814 = vsyncpa [#allocation12], 1 }
 0x580   :  { %815 = vsyncpa [#allocation4], 1 }
 0x581   :  { %816 = vsyncpa [#allocation15], 1 }

</bundles_post_ra>
